<compile_context>
chip_gen: v7x
topology: tpu7x:2x2x1
jax: 0.10.0
libtpu: 0.0.40
codegen_flags: <defaults>
</compile_context>

<pallas_src>
import functools

import jax
import jax.numpy as jnp
import numpy as np
from jax.experimental import pallas as pl
from jax.experimental.pallas import tpu as pltpu

LANE = 128
SUBLANE = 8


@functools.lru_cache(maxsize=1)
def _tpu_config():
    """Generation-dependent tuning.

    Returns (ncores, fused_max_elems, block_elems, vmem_limit_bytes)."""
    vmem_cap = None
    try:
        vmem_cap = int(pltpu.get_tpu_info().vmem_capacity_bytes)
    except Exception:
        vmem_cap = None
    kind = ""
    try:
        kind = jax.devices()[0].device_kind.lower()
    except Exception:
        kind = ""
    is_v7 = "7" in kind
    is_v5 = ("v5" in kind) or ("5 lite" in kind)
    if vmem_cap is None:
        vmem_cap = (64 << 20) if is_v7 else (128 << 20)
    if is_v7 or vmem_cap <= (64 << 20):
        # v7x: 2 TensorCores/chip, 64 MiB VMEM per core -> smaller fused cap.
        return 2, 1 << 19, 1 << 19, 48 << 20
    if is_v5:
        # v5e: 1 TensorCore, 128 MiB VMEM physical (16 MiB default scoped).
        return 1, 1 << 20, 1 << 18, 64 << 20
    # v6e (default): 1 TensorCore, 128 MiB VMEM physical.
    return 1, 1 << 20, 1 << 19, 64 << 20


def _choose_width(n):
    """Largest lane-dense width that divides n exactly (prefer >= 8 rows)."""
    best = None
    for w in (4096, 2048, 1024, 512, 256, 128):
        if n % w == 0:
            if best is None:
                best = w
            if n // w >= 8:
                return w
    return best


def _merge_stats(x_mean, x_var, mean, var, count_f, n_f, *,
                 min_var, use_mean, use_var):
    """Chan parallel merge + corrected_var(correction=1) + normalize scalars.

    NOTE: count is carried as float32 only for the merge weights; precision
    of n/(count+n) degrades past ~2^24 total samples.  The count returned to
    the caller stays integer."""
    new_total = count_f + n_f
    delta = x_mean - mean
    new_mean = mean + delta * n_f / new_total
    m2 = var * count_f + x_var * n_f + delta * delta * count_f * n_f / new_total
    new_var = m2 / new_total
    d = jnp.maximum(new_total - 1.0, 1.0)          # d = count - 1; if d <= 0: d = 1
    cvar = jnp.maximum(new_var * new_total / d, jnp.float32(min_var))
    eff_mean = new_mean if use_mean else jnp.float32(0.0)
    inv_std = jax.lax.rsqrt(cvar) if use_var else jnp.float32(1.0)
    return new_mean, new_var, eff_mean, inv_std


# --------------------------- fused single kernel ---------------------------

def _fused_kernel(rs_ref, x_ref, y_ref, xmean_ref, xvar_ref, *,
                  n, n_view, clip_max, min_var, use_mean, use_var):
    """Whole tensor resident in VMEM: reduce, merge, normalize, clip, write.

    Uses the same running-mean-shifted one-pass sums as the streaming path,
    so both paths produce identical statistics for identical data."""
    shift = rs_ref[0]                               # pre-shift by running mean
    xs = x_ref[...].astype(jnp.float32) - shift
    if n_view != n:
        # Padded sublane-dense view: mask the pad tail out of the sums.
        r, w = xs.shape
        ridx = jax.lax.broadcasted_iota(jnp.int32, (r, w), 0)
        cidx = jax.lax.broadcasted_iota(jnp.int32, (r, w), 1)
        full_rows = n // w
        rem = n - full_rows * w
        valid = (ridx < full_rows) | ((ridx == full_rows) & (cidx < rem))
        xs = jnp.where(valid, xs, 0.0)
    n_f = jnp.float32(n)
    s1 = jnp.sum(xs)
    s2 = jnp.sum(xs * xs)
    dm = s1 / n_f
    x_mean = shift + dm
    x_var = jnp.maximum(s2 / n_f - dm * dm, 0.0)
    _, _, eff_mean, inv_std = _merge_stats(
        x_mean, x_var, rs_ref[0], rs_ref[1], rs_ref[2], n_f,
        min_var=min_var, use_mean=use_mean, use_var=use_var)
    y = (xs + (shift - eff_mean)) * inv_std         # == (x - eff_mean) * inv_std
    if clip_max:
        y = jnp.clip(y, -clip_max, clip_max)
    y_ref[...] = y.astype(y_ref.dtype)              # pad rows sliced off on host
    xmean_ref[...] = jnp.reshape(x_mean, (1, 1))
    xvar_ref[...] = jnp.reshape(x_var, (1, 1))


# ------------------------- tiled two-pass kernels --------------------------

def _reduce_kernel(rs_ref, x_ref, psum_ref, psq_ref, *, n, br, w, full_rows):
    """Per-core per-lane partial sums of (x - running_mean) and its square."""
    c = pl.program_id(0)
    i = pl.program_id(1)

    @pl.when(i == 0)
    def _init():
        psum_ref[...] = jnp.zeros_like(psum_ref)
        psq_ref[...] = jnp.zeros_like(psq_ref)

    blk = c * pl.num_programs(1) + i                # un-clamped logical block id
    shift = rs_ref[0]                               # pre-shift by running mean
    full = (blk + 1) * br <= full_rows              # every element in-bounds

    @pl.when(full)
    def _accumulate_fast():                         # hot path: no iota / mask
        xs = x_ref[...].astype(jnp.float32) - shift
        psum_ref[...] += jnp.sum(xs, axis=0, keepdims=True)[None]
        psq_ref[...] += jnp.sum(xs * xs, axis=0, keepdims=True)[None]

    @pl.when(jnp.logical_not(full))
    def _accumulate_masked():                       # tail / pad rows / dead steps
        row0 = blk * br
        ridx = row0 + jax.lax.broadcasted_iota(jnp.int32, (br, w), 0)
        cidx = jax.lax.broadcasted_iota(jnp.int32, (br, w), 1)
        rem = n - full_rows * w                     # valid cols of row full_rows
        valid = (ridx < full_rows) | ((ridx == full_rows) & (cidx < rem))
        xs = jnp.where(valid, x_ref[...].astype(jnp.float32) - shift, 0.0)
        psum_ref[...] += jnp.sum(xs, axis=0, keepdims=True)[None]
        psq_ref[...] += jnp.sum(xs * xs, axis=0, keepdims=True)[None]


def _normalize_kernel(rs_ref, psum_ref, psq_ref, x_ref, y_ref, stats_ref, *,
                      n, clip_max, min_var, use_mean, use_var):
    """Merge scalars ONCE per core into SMEM, then normalize + clip per block."""
    @pl.when(pl.program_id(1) == 0)
    def _compute_scalars():
        n_f = jnp.float32(n)
        shift = rs_ref[0]
        s1 = jnp.sum(psum_ref[...])
        s2 = jnp.sum(psq_ref[...])
        dm = s1 / n_f
        x_mean = shift + dm
        x_var = jnp.maximum(s2 / n_f - dm * dm, 0.0)
        _, _, eff_mean, inv_std = _merge_stats(
            x_mean, x_var, rs_ref[0], rs_ref[1], rs_ref[2], n_f,
            min_var=min_var, use_mean=use_mean, use_var=use_var)
        stats_ref[0] = eff_mean
        stats_ref[1] = inv_std

    eff_mean = stats_ref[0]
    inv_std = stats_ref[1]
    y = (x_ref[...].astype(jnp.float32) - eff_mean) * inv_std
    if clip_max:
        y = jnp.clip(y, -clip_max, clip_max)
    # NOTE: the trailing partial (br, w) block reads garbage rows past the end
    # of x2d; Pallas masks the out-of-bounds part of this store, so those
    # values are discarded regardless of what the compute produced.
    y_ref[...] = y.astype(y_ref.dtype)


# --------------------------------- wrapper ---------------------------------

def running_mean_var_forward(x, mean, var, count, *, clip_max=10.0,
                             min_var=1e-6, use_mean=True, use_var=True):
    """Functional RunningMeanVar.forward (scalar mean/var case).

    Returns (y, new_mean, new_var, new_count)."""
    orig_shape = x.shape
    orig_dtype = x.dtype
    n = int(np.prod(orig_shape)) if len(orig_shape) else 1

    ncores, fused_max, block_elems, vmem_limit = _tpu_config()

    mean_f = jnp.asarray(mean, jnp.float32)
    var_f = jnp.asarray(var, jnp.float32)
    count_f = jnp.asarray(count, jnp.float32)
    n_f = jnp.float32(n)
    run_stats = jnp.stack([mean_f, var_f, count_f])
    kw = dict(clip_max=clip_max, min_var=min_var,
              use_mean=use_mean, use_var=use_var)

    w = _choose_width(n)

    if n <= fused_max:
        # ------------- fused path: one kernel, one read + one write -------------
        if w is not None:
            view = (n // w, w)                       # exact view, no pad
            x2d = x.reshape(view)
        else:
            # Ragged numel: pad to a sublane-dense (rows >= 8, 128) view and
            # mask the tail in-kernel (lane-dense store, 8x fewer vregs than
            # a (1, n) view).
            padded = ((n + 1023) // 1024) * 1024
            x2d = jnp.pad(x.reshape(-1), (0, padded - n)).reshape(-1, LANE)
            view = x2d.shape
        n_view = view[0] * view[1]
        y2d, xm, xv = pl.pallas_call(
            functools.partial(_fused_kernel, n=n, n_view=n_view, **kw),
            out_shape=(jax.ShapeDtypeStruct(view, orig_dtype),
                       jax.ShapeDtypeStruct((1, 1), jnp.float32),
                       jax.ShapeDtypeStruct((1, 1), jnp.float32)),
            grid_spec=pltpu.PrefetchScalarGridSpec(
                num_scalar_prefetch=1,
                grid=(1,),
                in_specs=[pl.BlockSpec(view, lambda i, rs: (0, 0))],
                out_specs=(pl.BlockSpec(view, lambda i, rs: (0, 0)),
                           pl.BlockSpec((1, 1), lambda i, rs: (0, 0)),
                           pl.BlockSpec((1, 1), lambda i, rs: (0, 0)))),
            compiler_params=pltpu.CompilerParams(
                dimension_semantics=("arbitrary",),
                vmem_limit_bytes=vmem_limit),
        )(run_stats, x2d)
        x_mean = xm[0, 0]
        x_var = xv[0, 0]
        if n_view != n:
            y = y2d.reshape(-1)[:n].reshape(orig_shape)
        else:
            y = y2d.reshape(orig_shape)
    else:
        # ------------------------ tiled streaming path ------------------------
        if w is None:
            # Rare fallback: large tensor whose numel is not a multiple of 128.
            # TODO(synk): a 1-D masked layout would avoid this extra HBM copy.
            pad = (-n) % LANE
            x2d = jnp.pad(x.reshape(-1), (0, pad)).reshape(-1, LANE)
            w = LANE
        else:
            x2d = x.reshape(n // w, w)
        rows = x2d.shape[0]
        full_rows = n // w                          # rows with every element valid
        br = max(SUBLANE, (block_elems // w) // SUBLANE * SUBLANE)
        br = min(br, rows)
        nblocks = pl.cdiv(rows, br)
        nc = max(1, min(ncores, nblocks))           # 2 only on v7x
        g2 = pl.cdiv(nblocks, nc)

        # pass 1: per-core, per-lane partial sums (reduction axis is last).
        psum, psq = pl.pallas_call(
            functools.partial(_reduce_kernel, n=n, br=br, w=w,
                              full_rows=full_rows),
            out_shape=(jax.ShapeDtypeStruct((nc, 1, w), jnp.float32),
                       jax.ShapeDtypeStruct((nc, 1, w), jnp.float32)),
            grid_spec=pltpu.PrefetchScalarGridSpec(
                num_scalar_prefetch=1,
                grid=(nc, g2),
                in_specs=[pl.BlockSpec(
                    (br, w),
                    lambda c, i, rs: (jnp.minimum(c * g2 + i, nblocks - 1), 0))],
                out_specs=(pl.BlockSpec((1, 1, w), lambda c, i, rs: (c, 0, 0)),
                           pl.BlockSpec((1, 1, w), lambda c, i, rs: (c, 0, 0)))),
            compiler_params=pltpu.CompilerParams(
                dimension_semantics=("parallel", "arbitrary"),
                vmem_limit_bytes=vmem_limit),
        )(run_stats, x2d)

        # pass 2: merged scalars computed once per core (SMEM scratch), then
        # elementwise normalize + clip streamed block-by-block.
        y2d = pl.pallas_call(
            functools.partial(_normalize_kernel, n=n, **kw),
            out_shape=jax.ShapeDtypeStruct((rows, w), orig_dtype),
            grid_spec=pltpu.PrefetchScalarGridSpec(
                num_scalar_prefetch=1,
                grid=(nc, g2),
                in_specs=[pl.BlockSpec((nc, 1, w), lambda c, i, rs: (0, 0, 0)),
                          pl.BlockSpec((nc, 1, w), lambda c, i, rs: (0, 0, 0)),
                          pl.BlockSpec(
                              (br, w),
                              lambda c, i, rs: (jnp.minimum(c * g2 + i,
                                                            nblocks - 1), 0))],
                out_specs=pl.BlockSpec(
                    (br, w),
                    lambda c, i, rs: (jnp.minimum(c * g2 + i, nblocks - 1), 0)),
                scratch_shapes=[pltpu.SMEM((2,), jnp.float32)]),
            compiler_params=pltpu.CompilerParams(
                dimension_semantics=("parallel", "arbitrary"),
                vmem_limit_bytes=vmem_limit),
        )(run_stats, psum, psq, x2d)

        # Returned statistics (same math as in-kernel; off pass-2's launch path).
        s1 = jnp.sum(psum)
        s2 = jnp.sum(psq)
        dm = s1 / n_f
        x_mean = mean_f + dm
        x_var = jnp.maximum(s2 / n_f - dm * dm, 0.0)
        if rows * w != n:
            y = y2d.reshape(-1)[:n].reshape(orig_shape)
        else:
            y = y2d.reshape(orig_shape)

    new_mean, new_var, _, _ = _merge_stats(
        x_mean, x_var, mean_f, var_f, count_f, n_f,
        min_var=min_var, use_mean=use_mean, use_var=use_var)
    new_count = count + n
    return y, new_mean, new_var, new_count


# ------------------------------ reference ----------------------------------

def _reference(x, mean, var, count, *, clip_max=10.0, min_var=1e-6):
    """Pure-JAX replica of the PyTorch module for correctness checks."""
    flat = x.reshape(-1).astype(jnp.float32)
    n = flat.shape[0]
    x_mean = jnp.mean(flat)
    x_var = jnp.mean((flat - x_mean) ** 2)
    delta = x_mean - mean
    new_total = count + n
    m2 = var * count + x_var * n + delta ** 2 * count * n / new_total
    new_mean = mean + delta * n / new_total
    new_var = m2 / new_total
    d = new_total - 1 if new_total - 1 > 0 else 1
    cvar = jnp.maximum(new_var * new_total / d, min_var)
    y = (x.astype(jnp.float32) - new_mean) / jnp.sqrt(cvar)
    y = jnp.clip(y, -clip_max, clip_max).astype(x.dtype)
    return y, new_mean, new_var, new_total


if __name__ == "__main__":
    fwd = jax.jit(running_mean_var_forward,
                  static_argnames=("clip_max", "min_var", "use_mean", "use_var"))
    k1, k2, k3 = jax.random.split(jax.random.PRNGKey(0), 3)

    # --- test 1: module-default small forward (fused single-kernel path) ---
    x1 = jax.random.normal(k1, (2, 4, 16, 16), dtype=jnp.float32) * 3.0 + 1.5
    y1, m1, v1, c1 = fwd(x1, jnp.float32(0.0), jnp.float32(1.0), jnp.int32(0))
    jax.block_until_ready(y1)
    y1r, m1r, v1r, c1r = _reference(x1, 0.0, 1.0, 0)
    np.testing.assert_allclose(np.asarray(y1), np.asarray(y1r), rtol=1e-5, atol=1e-5)
    np.testing.assert_allclose(float(m1), float(m1r), rtol=1e-5, atol=1e-5)
    np.testing.assert_allclose(float(v1), float(v1r), rtol=1e-4, atol=1e-5)
    assert int(c1) == int(c1r)

    # --- test 2: large tensor -> tiled 2-pass path (masked tail block,
    #     per-core partial accumulators, non-zero running stats) ---
    x2 = jax.random.normal(k2, (2, 4, 8292, 16), dtype=jnp.float32) * 2.0 - 0.7
    y2, m2, v2, c2 = fwd(x2, jnp.float32(0.5), jnp.float32(2.0), jnp.int32(1000))
    jax.block_until_ready(y2)
    y2r, m2r, v2r, c2r = _reference(x2, 0.5, 2.0, 1000)
    np.testing.assert_allclose(np.asarray(y2), np.asarray(y2r), rtol=1e-3, atol=2e-3)
    np.testing.assert_allclose(float(m2), float(m2r), rtol=1e-4, atol=1e-4)
    np.testing.assert_allclose(float(v2), float(v2r), rtol=2e-3, atol=1e-4)
    assert int(c2) == int(c2r)

    # --- test 3: numel not a multiple of 128 -> padded (rows, 128) fused view ---
    x3 = jax.random.normal(k3, (3, 7, 11), dtype=jnp.float32) * 0.5 + 0.25
    y3, m3, v3, c3 = fwd(x3, jnp.float32(0.0), jnp.float32(1.0), jnp.int32(0))
    jax.block_until_ready(y3)
    y3r, m3r, v3r, c3r = _reference(x3, 0.0, 1.0, 0)
    np.testing.assert_allclose(np.asarray(y3), np.asarray(y3r), rtol=1e-5, atol=1e-5)
    assert int(c3) == int(c3r)

    print("KERNEL_OK")
</pallas_src>

<mosaic_0001>
module attributes {stable_mosaic.version = 11 : i64} {
  func.func @_fused_kernel(%arg0: i32, %arg1: memref<3xf32, #tpu.memory_space<smem>>, %arg2: memref<8x256xf32, #tpu.memory_space<vmem>>, %arg3: memref<8x256xf32, #tpu.memory_space<vmem>>, %arg4: memref<1x1xf32, #tpu.memory_space<vmem>>, %arg5: memref<1x1xf32, #tpu.memory_space<vmem>>) attributes {dimension_semantics = [#tpu.dimension_semantics<arbitrary>], iteration_bounds = array<i64: 1>, scalar_prefetch = 1 : i64, scratch_operands = 0 : i64, tpu.core_type = #tpu.core_type<tc>, window_params = [{pipeline_mode = #tpu.pipeline_mode<synchronous>, transform_indices = @transform_0, window_bounds = array<i64: 8, 256>}, {pipeline_mode = #tpu.pipeline_mode<synchronous>, transform_indices = @transform_1, window_bounds = array<i64: 8, 256>}, {pipeline_mode = #tpu.pipeline_mode<synchronous>, transform_indices = @transform_2, window_bounds = array<i64: 1, 1>}, {pipeline_mode = #tpu.pipeline_mode<synchronous>, transform_indices = @transform_3, window_bounds = array<i64: 1, 1>}]} {
    %c0 = arith.constant 0 : index
    %0 = memref.load %arg1[%c0] : memref<3xf32, #tpu.memory_space<smem>>
    %c0_0 = arith.constant 0 : index
    %c0_1 = arith.constant 0 : index
    %1 = vector.load %arg2[%c0_0, %c0_1] : memref<8x256xf32, #tpu.memory_space<vmem>>, vector<8x256xf32>
    %2 = vector.broadcast %0 : f32 to vector<8x256xf32>
    %3 = arith.subf %1, %2 : vector<8x256xf32>
    %4 = vector.shape_cast %3 : vector<8x256xf32> to vector<1x8x256xf32>
    %cst = arith.constant dense<0.000000e+00> : vector<1xf32>
    %5 = vector.multi_reduction <add>, %4, %cst [1, 2] : vector<1x8x256xf32> to vector<1xf32>
    %6 = vector.shape_cast %5 : vector<1xf32> to vector<1x1x1xf32>
    %7 = vector.extract %6[0, 0, 0] : f32 from vector<1x1x1xf32>
    %8 = arith.mulf %3, %3 : vector<8x256xf32>
    %9 = vector.shape_cast %8 : vector<8x256xf32> to vector<1x8x256xf32>
    %cst_2 = arith.constant dense<0.000000e+00> : vector<1xf32>
    %10 = vector.multi_reduction <add>, %9, %cst_2 [1, 2] : vector<1x8x256xf32> to vector<1xf32>
    %11 = vector.shape_cast %10 : vector<1xf32> to vector<1x1x1xf32>
    %12 = vector.extract %11[0, 0, 0] : f32 from vector<1x1x1xf32>
    %cst_3 = arith.constant 2.048000e+03 : f32
    %13 = arith.divf %7, %cst_3 : f32
    %14 = arith.addf %0, %13 : f32
    %cst_4 = arith.constant 2.048000e+03 : f32
    %15 = arith.divf %12, %cst_4 : f32
    %16 = arith.mulf %13, %13 : f32
    %17 = arith.subf %15, %16 : f32
    %cst_5 = arith.constant 0.000000e+00 : f32
    %18 = arith.maximumf %17, %cst_5 : f32
    %c0_6 = arith.constant 0 : index
    %19 = memref.load %arg1[%c0_6] : memref<3xf32, #tpu.memory_space<smem>>
    %c1 = arith.constant 1 : index
    %20 = memref.load %arg1[%c1] : memref<3xf32, #tpu.memory_space<smem>>
    %c2 = arith.constant 2 : index
    %21 = memref.load %arg1[%c2] : memref<3xf32, #tpu.memory_space<smem>>
    %cst_7 = arith.constant 2.048000e+03 : f32
    %22 = arith.addf %21, %cst_7 : f32
    %23 = arith.subf %14, %19 : f32
    %cst_8 = arith.constant 2.048000e+03 : f32
    %24 = arith.mulf %23, %cst_8 : f32
    %25 = arith.divf %24, %22 : f32
    %26 = arith.addf %19, %25 : f32
    %27 = arith.mulf %20, %21 : f32
    %cst_9 = arith.constant 2.048000e+03 : f32
    %28 = arith.mulf %18, %cst_9 : f32
    %29 = arith.addf %27, %28 : f32
    %30 = arith.mulf %23, %23 : f32
    %31 = arith.mulf %30, %21 : f32
    %cst_10 = arith.constant 2.048000e+03 : f32
    %32 = arith.mulf %31, %cst_10 : f32
    %33 = arith.divf %32, %22 : f32
    %34 = arith.addf %29, %33 : f32
    %35 = arith.divf %34, %22 : f32
    %cst_11 = arith.constant 1.000000e+00 : f32
    %36 = arith.subf %22, %cst_11 : f32
    %cst_12 = arith.constant 1.000000e+00 : f32
    %37 = arith.maximumf %36, %cst_12 : f32
    %38 = arith.mulf %35, %22 : f32
    %39 = arith.divf %38, %37 : f32
    %cst_13 = arith.constant 9.99999997E-7 : f32
    %40 = arith.maximumf %39, %cst_13 : f32
    %41 = math.rsqrt %40 : f32
    %42 = arith.subf %0, %26 : f32
    %43 = vector.broadcast %42 : f32 to vector<8x256xf32>
    %44 = arith.addf %3, %43 : vector<8x256xf32>
    %45 = vector.broadcast %41 : f32 to vector<8x256xf32>
    %46 = arith.mulf %44, %45 : vector<8x256xf32>
    %cst_14 = arith.constant -1.000000e+01 : f32
    %cst_15 = arith.constant 1.000000e+01 : f32
    %47 = vector.broadcast %cst_14 : f32 to vector<8x256xf32>
    %48 = arith.maximumf %47, %46 : vector<8x256xf32>
    %49 = vector.broadcast %cst_15 : f32 to vector<8x256xf32>
    %50 = arith.minimumf %49, %48 : vector<8x256xf32>
    %c0_16 = arith.constant 0 : index
    %c0_17 = arith.constant 0 : index
    %51 = vector.load %arg3[%c0_16, %c0_17] : memref<8x256xf32, #tpu.memory_space<vmem>>, vector<8x256xf32>
    tpu.vector_store %arg3[%c0_16, %c0_17], %50 {strides = array<i32>} : memref<8x256xf32, #tpu.memory_space<vmem>>, vector<8x256xf32>,
    %52 = vector.broadcast %14 : f32 to vector<1x1xf32>
    %c0_18 = arith.constant 0 : index
    %c0_19 = arith.constant 0 : index
    %53 = vector.load %arg4[%c0_18, %c0_19] : memref<1x1xf32, #tpu.memory_space<vmem>>, vector<1x1xf32>
    tpu.vector_store %arg4[%c0_18, %c0_19], %52 {strides = array<i32>} : memref<1x1xf32, #tpu.memory_space<vmem>>, vector<1x1xf32>,
    %54 = vector.broadcast %18 : f32 to vector<1x1xf32>
    %c0_20 = arith.constant 0 : index
    %c0_21 = arith.constant 0 : index
    %55 = vector.load %arg5[%c0_20, %c0_21] : memref<1x1xf32, #tpu.memory_space<vmem>>, vector<1x1xf32>
    tpu.vector_store %arg5[%c0_20, %c0_21], %54 {strides = array<i32>} : memref<1x1xf32, #tpu.memory_space<vmem>>, vector<1x1xf32>,
    return
  }
  func.func @transform_0(%arg0: i32, %arg1: memref<3xf32, #tpu.memory_space<smem>>) -> (i32, i32) {
    %c0_i32 = arith.constant 0 : i32
    %c0_i32_0 = arith.constant 0 : i32
    %c0_i32_1 = arith.constant 0 : i32
    return %c0_i32, %c0_i32_0 : i32, i32
  }
  func.func @transform_1(%arg0: i32, %arg1: memref<3xf32, #tpu.memory_space<smem>>) -> (i32, i32) {
    %c0_i32 = arith.constant 0 : i32
    %c0_i32_0 = arith.constant 0 : i32
    %c0_i32_1 = arith.constant 0 : i32
    return %c0_i32, %c0_i32_0 : i32, i32
  }
  func.func @transform_2(%arg0: i32, %arg1: memref<3xf32, #tpu.memory_space<smem>>) -> (i32, i32) {
    %c0_i32 = arith.constant 0 : i32
    %c0_i32_0 = arith.constant 0 : i32
    %c0_i32_1 = arith.constant 0 : i32
    return %c0_i32, %c0_i32_0 : i32, i32
  }
  func.func @transform_3(%arg0: i32, %arg1: memref<3xf32, #tpu.memory_space<smem>>) -> (i32, i32) {
    %c0_i32 = arith.constant 0 : i32
    %c0_i32_0 = arith.constant 0 : i32
    %c0_i32_1 = arith.constant 0 : i32
    return %c0_i32, %c0_i32_0 : i32, i32
  }
}

</mosaic_0001>

<bundles_post_ra>
// kernel: running_mean_var_forward.1
= control target key start
LH: loop header
LB: loop body
LE: loop exit
PB: predicated region body
PF: predicated region fallthrough
CT: control target
= control target key end

     0   :  { %s439_s0 = inlined_call_operand.hbm [shape: f32[3], index: 0, kind: input, shape index: {}]   ;;  %s440_s1 = inlined_call_operand.hbm [shape: f32[8,256], index: 1, kind: input, shape index: {}]   ;;  %s441_s2 = inlined_call_operand.hbm [shape: f32[8,256], index: 2, kind: output, shape index: {0}]   ;;  %s442_s3 = inlined_call_operand.hbm [shape: f32[1,1], index: 3, kind: output, shape index: {1}]   ;;  %s443_s4 = inlined_call_operand.hbm [shape: f32[1,1], index: 4, kind: output, shape index: {2}]  }
   0x1   :  { %s193_s17 = scalar_lea.hbm %s439_s0, 16 }
   0x2   :  { %p194_p0 = scmp.ne.s32.totalorder %s439_s0, %s193_s17  ;;  %p197_p1 = scmp.lt.u32.totalorder %s193_s17, %s439_s0 }
   0x4   :  { %p199_p2 = pnand %p197_p1, %p194_p0 }
   0x6   :  { %202 = shalt.err (!%p199_p2)  }
   0x7   :  { %s299_s22 = smov [#allocation3]  }
   0x8   :  { %11 = dma.hbm_to_smem %s439_s0, 16, %s299_s22, [#allocation2] }
   0x9   :  { %291 = dma.done.wait [#allocation2], 16 }
   0xa   :  { %292 = vsyncadd [#allocation2], 4294967280 }
   0xb   :  { %13 = sfence }
   0xc   :  { %14 = vsyncpa [#allocation5], 0 }
   0xd   :  { %15 = vsyncpa [#allocation6], 0 }
   0xe   :  { %16 = vsyncpa [#allocation9], 0  ;;  %s300_s25 = smov [#allocation4]   ;;  %s203_s29 = scalar_lea.hbm %s440_s1, 256 }
   0xf   :  { %s23_s26 = sshll.u32 %s300_s25, 4  ;;  %p204_p3 = scmp.ne.s32.totalorder %s440_s1, %s203_s29  ;;  %s24_s26 = int_to_ptr.vmem [resolvable:$true] %s23_s26 }
  0x10   :  { %p207_p4 = scmp.lt.u32.totalorder %s203_s29, %s440_s1 }
  0x12   :  { %p209_p5 = pnand %p207_p4, %p204_p3 }
  0x14   :  { %212 = shalt.err (!%p209_p5)
}
  0x15   :  { %s213_s0 = scalar_lea.vmem %s24_s26, 256  ;;  %p218_p7 = scmp.lt.s32.totalorder %s24_s26, %s24_s26 }
  0x16   :  { %p214_p6 = scmp.ne.s32.totalorder %s24_s26, %s213_s0  ;;  %p219_p8 = scmp.lt.s32.totalorder %s213_s0, %s213_s0 }
  0x18   :  { %p220_p9 = por %p219_p8, %p218_p7 }
  0x1a   :  { %p221_p10 = pnand %p220_p9, %p214_p6 }
  0x1c   :  { %224 = shalt.err (!%p221_p10)
}
  0x1d   :  { %26 = dma.hbm_to_vmem [thread:$0]  %s440_s1, 256, %s24_s26, [#allocation5]  }
  0x1e   :  { %293 = dma.done.wait [#allocation5], 256  }
  0x1f   :  { %294 = vsyncadd [#allocation5], 4294967040  ;;  %s356_s10 = sld [smem:[#allocation3]]  ;;  %v31_v0 = vld [vmem:[#allocation4] sm:$0xff]  ;;  %v32_v1 = vld [vmem:[#allocation4 + $0x8] sm:$0xff]  ;;  %s369_s1 = sld [smem:[#allocation3 + $0x2]] }
  0x20   :  { %s301_s13 = smov 1.0   ;;  %s164_s15 = sld [smem:[#allocation3 + $0x1]]  ;;  %vm118_vm0 = vcmask 0  }
  0x21   :  { %s302_s28 = smov 0.0   ;;  %s303_s7 = smov [#allocation8]  }
  0x22   :  { %s138_s0 = sshll.u32 %s303_s7, 4  ;;  %s139_s0 = int_to_ptr.vmem [resolvable:$true] %s138_s0 }
  0x23   :  { %p230_p12 = scmp.lt.s32.totalorder %s139_s0, %s139_s0 }
  0x25   :  { %v33_v2 = vstv %s356_s10  ;;  %s372_s11 = sadd.f32 2048.0, %s369_s1 }
  0x26   :  { %v359_v3 = vsub.f32 %v31_v0, %v33_v2  ;;  %v361_v4 = vsub.f32 %v32_v1, %v33_v2  ;;  %s78_s23 = smul.f32 %s369_s1, %s164_s15 }
  0x27   :  { %s166_s12 = sadd.f32 -1.0, %s372_s11  ;;  %v73_v11 = vstv %s372_s11 }
  0x28   :  { %v36_v5 = vadd.f32 %v361_v4, %v359_v3  ;;  %v46_v6 = vmul.f32 %v359_v3, %v359_v3  ;;  %v47_v7 = vmul.f32 %v361_v4, %v361_v4  ;;  %187 = vrcp.f32 %v73_v11 }
  0x29   :  { %s94_s14 = smax.f32 %s301_s13, %s166_s12  ;;  %s304_s12 = smov [#allocation10]  }
  0x2a   :  { %37 = vadd.xlane.f32.xlu0 %v36_v5  ;;  %v48_v8 = vadd.f32 %v47_v7, %v46_v6  ;;  %v96_v13 = vstv %s94_s14  ;;  %s148_s13 = sshll.u32 %s304_s12, 4  ;;  %s388_s13 = int_to_ptr.vmem [resolvable:$true] %s148_s13 }
  0x2b   :  { %189 = vrcp.f32 %v96_v13 }
  0x2e   :  { %49 = vadd.xlane.f32.xlu0 %v48_v8 }
  0x32   :  { %v188_v24 = vpop.eup %187 }
  0x35   :  { %v190_v26 = vpop.eup %189 }
  0xb7   :  { %v38_v9 = vpop.xlane.xlu0 %37 }
  0xb8   :  { %v39_v10 = vrot.slane %v38_v9, 4 }
  0xba   :  { %v40_v12 = vadd.f32 %v39_v10, %v38_v9 }
  0xbb   :  { %v50_v14 = vpop.xlane.xlu0 %49 }
  0xbc   :  { %v41_v15 = vrot.slane %v40_v12, 2  ;;  %v51_v16 = vrot.slane %v50_v14, 4 }
  0xbe   :  { %v52_v17 = vadd.f32 %v51_v16, %v50_v14  ;;  %v42_v18 = vadd.f32 %v41_v15, %v40_v12 }
  0xc0   :  { %v53_v19 = vrot.slane %v52_v17, 2  ;;  %v43_v20 = vrot.slane %v42_v18, 1 }
  0xc2   :  { %v54_v21 = vadd.f32 %v53_v19, %v52_v17  ;;  %v44_v22 = vadd.f32 %v43_v20, %v42_v18 }
  0xc4   :  { %169 = vpush %v44_v22  ;;  %v55_v23 = vrot.slane %v54_v21, 1 }
  0xc6   :  { %v56_v25 = vadd.f32 %v55_v23, %v54_v21 }
  0xc8   :  { %171 = vpush %v56_v25 }
  0xc9   :  { %173 = vpush %v188_v24 }
  0xca   :  { %175 = vpush %v190_v26 }
  0xf5   :  { %s170_s16 = spop %169 }
  0xf6   :  { %s60_s17 = smul.f32 0.00048828125, %s170_s16  ;;  %s225_s16 = scalar_lea.vmem %s139_s0, 16 }
  0xf7   :  { %p226_p11 = scmp.ne.s32.totalorder %s139_s0, %s225_s16 }
  0xf8   :  { %s61_s18 = sadd.f32 %s60_s17, %s356_s10  ;;  %s65_s19 = smul.f32 %s60_s17, %s60_s17 }
  0xf9   :  { %s172_s20 = spop %171 }
  0xfa   :  { %s71_s21 = ssub.f32 %s61_s18, %s356_s10  ;;  %s64_s22 = smul.f32 0.00048828125, %s172_s20  ;;  %v117_v27 = vstv %s61_s18 }
  0xfb   :  { %119 = vst.msk [vmem:[#allocation8] sm:$0x1] %vm118_vm0, %v117_v27  ;;  %s380_s27 = spop %173 }
  0xfc   :  { %s81_s24 = smul.f32 %s71_s21, %s71_s21  ;;  %s66_s25 = ssub.f32 %s64_s22, %s65_s19 }
  0xfd   :  { %s72_s26 = smul.f32 2048.0, %s71_s21 }
  0xfe   :  { %s67_s29 = smax.f32 %s302_s28, %s66_s25  ;;  %s82_s30 = smul.f32 %s369_s1, %s81_s24 }
  0xff   :  { %s79_s5 = smul.f32 2048.0, %s67_s29  ;;  %v120_v28 = vstv %s67_s29  ;;  %s229_s1 = scalar_lea.vmem %s139_s0, 32 }
 0x100   :  { %s384_s6 = smul.f32 %s380_s27, %s72_s26  ;;  %121 = vst.msk [vmem:[#allocation10] sm:$0x1] %vm118_vm0, %v120_v28  ;;  %p231_p13 = scmp.lt.s32.totalorder %s229_s1, %s225_s16 }
 0x101   :  { %s80_s8 = sadd.f32 %s79_s5, %s78_s23  ;;  %s83_s9 = smul.f32 2048.0, %s82_s30 }
 0x102   :  { %p232_p0 = por %p231_p13, %p230_p12 }
 0x103   :  { %s87_s14 = smul.f32 %s380_s27, %s83_s9 }
 0x104   :  { %p233_p1 = pnand %p232_p0, %p226_p11 }
 0x105   :  { %s88_s15 = sadd.f32 %s87_s14, %s80_s8 }
 0x106   :  { %236 = shalt.err (!%p233_p1)
}
 0x107   :  { %s237_s19 = scalar_lea.hbm %s442_s3, 16 }
 0x108   :  { %p238_p2 = scmp.ne.s32.totalorder %s442_s3, %s237_s19  ;;  %p241_p3 = scmp.lt.u32.totalorder %s237_s19, %s442_s3 }
 0x10a   :  { %p243_p4 = pnand %p241_p3, %p238_p2 }
 0x10c   :  { %246 = shalt.err (!%p243_p4)
}
 0x10d   :  { %141 = dma.vmem_to_hbm [thread:$0]  %s139_s0, 16, %s442_s3, [#allocation9]  }
 0x10e   :  { %s92_s26 = smul.f32 %s380_s27, %s88_s15  ;;  %s176_s28 = spop %175 }
 0x10f   :  { %s247_s29 = scalar_lea.vmem %s388_s13, 16  ;;  %s251_s30 = scalar_lea.vmem %s388_s13, 32 }
 0x110   :  { %p248_p5 = scmp.ne.s32.totalorder %s388_s13, %s247_s29  ;;  %p252_p6 = scmp.lt.s32.totalorder %s388_s13, %s388_s13 }
 0x111   :  { %p253_p7 = scmp.lt.s32.totalorder %s251_s30, %s247_s29 }
 0x113   :  { %p254_p8 = por %p253_p7, %p252_p6 }
 0x115   :  { %p255_p9 = pnand %p254_p8, %p248_p5 }
 0x117   :  { %258 = shalt.err (!%p255_p9)
}
 0x118   :  { %s259_s8 = scalar_lea.hbm %s443_s4, 16 }
 0x119   :  { %p260_p10 = scmp.ne.s32.totalorder %s443_s4, %s259_s8  ;;  %p263_p11 = scmp.lt.u32.totalorder %s259_s8, %s443_s4 }
 0x11b   :  { %p265_p12 = pnand %p263_p11, %p260_p10 }
 0x11d   :  { %268 = shalt.err (!%p265_p12)
}
 0x11e   :  { %151 = dma.vmem_to_hbm [thread:$0]  %s388_s13, 16, %s443_s4, [#allocation9]  }
 0x11f   :  { %s95_s15 = smul.f32 %s92_s26, %s372_s11  ;;  %s305_s1 = smov 1e-06  }
 0x120   :  { %s77_s18 = sadd.f32 %s384_s6, %s356_s10  ;;  %s306_s21 = smov [#allocation7]  }
 0x121   :  { %s99_s16 = smul.f32 %s176_s28, %s95_s15  ;;  %s128_s22 = sshll.u32 %s306_s21, 4  ;;  %s129_s22 = int_to_ptr.vmem [resolvable:$true] %s128_s22 }
 0x122   :  { %s104_s19 = ssub.f32 %s356_s10, %s77_s18  ;;  %s269_s4 = scalar_lea.vmem %s129_s22, 256 }
 0x123   :  { %s100_s17 = smax.f32 %s305_s1, %s99_s16  ;;  %p270_p13 = scmp.ne.s32.totalorder %s129_s22, %s269_s4 }
 0x124   :  { %v101_v29 = vstv %s100_s17  ;;  %v105_v31 = vstv %s104_s19  ;;  %p274_p0 = scmp.lt.s32.totalorder %s129_s22, %s129_s22  ;;  %p275_p1 = scmp.lt.s32.totalorder %s269_s4, %s269_s4 }
 0x125   :  { %191 = vrsqrt.f32 %v101_v29  ;;  %v106_v32 = vadd.f32 %v105_v31, %v359_v3  ;;  %v107_v33 = vadd.f32 %v105_v31, %v361_v4 }
 0x126   :  { %p276_p2 = por %p275_p1, %p274_p0 }
 0x128   :  { %p277_p3 = pnand %p276_p2, %p270_p13 }
 0x12f   :  { %v192_v30 = vpop.eup %191 }
 0x130   :  { %177 = vpush %v192_v30 }
 0x161   :  { %s178_s20 = spop %177 }
 0x162   :  { %v108_v34 = vstv %s178_s20 }
 0x163   :  { %v109_v35 = vmul.f32 %v108_v34, %v106_v32  ;;  %v110_v36 = vmul.f32 %v108_v34, %v107_v33 }
 0x165   :  { %v167_v37 = vclamps-f32 %v109_v35, 10.0  ;;  %v168_v38 = vclamps-f32 %v110_v36, 10.0 }
 0x167   :  { %115 = vst [vmem:[#allocation7] sm:$0xff] %v167_v37  ;;  %116 = vst [vmem:[#allocation7 + $0x8] sm:$0xff] %v168_v38 }
 0x168   :  { %280 = shalt.err (!%p277_p3)
}
 0x169   :  { %s281_s6 = scalar_lea.hbm %s441_s2, 256 }
 0x16a   :  { %p282_p4 = scmp.ne.s32.totalorder %s441_s2, %s281_s6  ;;  %p285_p5 = scmp.lt.u32.totalorder %s281_s6, %s441_s2 }
 0x16c   :  { %p287_p6 = pnand %p285_p5, %p282_p4 }
 0x16e   :  { %290 = shalt.err (!%p287_p6)
}
 0x16f   :  { %131 = dma.vmem_to_hbm [thread:$0]  %s129_s22, 256, %s441_s2, [#allocation6]  }
 0x170   :  { %295 = dma.done.wait [#allocation6], 256  }
 0x171   :  { %296 = vsyncadd [#allocation6], 4294967040 }
 0x172   :  { %297 = dma.done.wait [#allocation9], 32  }
 0x173   :  { %298 = vsyncadd [#allocation9], 4294967264 }
 0x174   :  { %161 = vsyncpa [#allocation5], 1 }
 0x175   :  { %162 = vsyncpa [#allocation6], 1 }
 0x176   :  { %163 = vsyncpa [#allocation9], 1 }

</bundles_post_ra>
